<compile_context>
chip_gen: v5e
topology: v5e:2x2
jax: 0.10.0
libtpu: 0.0.40
codegen_flags: <defaults>
</compile_context>

<pallas_src>
import math

import jax
import jax.numpy as jnp
import numpy as np
from jax.experimental import pallas as pl
from jax.experimental.pallas import tpu as pltpu


def _ceil_to(x, m):
    return -(-x // m) * m


def _time_embedding_kernel(t_ref, w1_ref, b1_ref, w2_ref, b2_ref, out_ref):
    # t_ref:  [TB, 1]      raw float timesteps for this batch tile
    # w1_ref: [C//4, C]    lin1 weight, laid out [in, out]
    # w2_ref: [C, C]       lin2 weight, laid out [in, out]
    # b1_ref/b2_ref: [1, C]
    # out_ref: [TB, C]     lane-dense when C % 128 == 0 -> unmasked stores
    feat_dim = w1_ref.shape[0]              # C // 4   (static)
    half_dim = feat_dim // 2                # C // 8   (static)
    scale = math.log(10000.0) / (half_dim - 1)

    # ---- sinusoidal features, fused in-kernel (VPU/EUP work) ----
    idx = jax.lax.broadcasted_iota(jnp.int32, (1, half_dim), 1).astype(jnp.float32)
    freqs = jnp.exp(idx * (-scale))                     # [1, half_dim]
    ang = t_ref[...] * freqs                            # [TB, half_dim]
    s = jnp.sin(ang)
    c = jnp.cos(ang)

    # ---- lin1 + bias: concat([sin, cos]) @ W1 expressed as two sublane-aligned
    #      slices of W1 (avoids an in-kernel lane concat); K = C//8 each. ----
    w1_sin = w1_ref[pl.ds(0, half_dim), :]
    w1_cos = w1_ref[pl.ds(half_dim, half_dim), :]
    h = (jnp.dot(s, w1_sin, preferred_element_type=jnp.float32,
                 precision=jax.lax.Precision.HIGHEST)
         + jnp.dot(c, w1_cos, preferred_element_type=jnp.float32,
                   precision=jax.lax.Precision.HIGHEST)
         + b1_ref[...])

    # ---- Swish: exp and reciprocal both land in the otherwise-idle EUP slot ----
    h = h * pl.reciprocal(1.0 + jnp.exp(-h), approx=True)

    # ---- lin2 + bias, single write of the output tile ----
    out_ref[...] = (jnp.dot(h, w2_ref[...], preferred_element_type=jnp.float32,
                            precision=jax.lax.Precision.HIGHEST)
                    + b2_ref[...]).astype(out_ref.dtype)


def prepare_params(params):
    """One-time (init-time) layout prep: weights -> [in, out], biases -> [1, C]."""
    C = params["lin2_w"].shape[0]
    return {
        "w1": jnp.asarray(params["lin1_w"], jnp.float32).T,            # [C//4, C]
        "b1": jnp.asarray(params["lin1_b"], jnp.float32).reshape(1, C),
        "w2": jnp.asarray(params["lin2_w"], jnp.float32).T,            # [C, C]
        "b2": jnp.asarray(params["lin2_b"], jnp.float32).reshape(1, C),
    }


def time_embedding(t, prepared, n_channels, block_b=512):
    """JAX/Pallas equivalent of TimeEmbedding.forward. t: [B] float timesteps."""
    B = t.shape[0]
    C = n_channels
    assert C % 8 == 0 and C >= 16, "n_channels must be a multiple of 8 and >= 16"
    feat_dim = C // 4

    w1, b1, w2, b2 = prepared["w1"], prepared["b1"], prepared["w2"], prepared["b2"]
    t2 = t.astype(jnp.float32).reshape(B, 1)

    # Batch tiling: no padding — the edge block (if any) is masked on writeback.
    block_b = max(8, (block_b // 8) * 8)
    if B <= block_b:
        TB = B                                   # full-extent block, grid=(1,)
    else:
        # keep >= 2 grid steps so "parallel" can shard across v7x's two TCs,
        # and keep the tile sublane-aligned
        TB = min(block_b, _ceil_to(pl.cdiv(B, 2), 8))

    out = pl.pallas_call(
        _time_embedding_kernel,
        out_shape=jax.ShapeDtypeStruct((B, C), jnp.float32),
        grid_spec=pltpu.PrefetchScalarGridSpec(
            num_scalar_prefetch=0,
            grid=(pl.cdiv(B, TB),),
            in_specs=[
                pl.BlockSpec((TB, 1), lambda i: (i, 0)),        # raw timesteps
                pl.BlockSpec((feat_dim, C), lambda i: (0, 0)),  # weights/biases:
                pl.BlockSpec((1, C), lambda i: (0, 0)),         # constant index_map
                pl.BlockSpec((C, C), lambda i: (0, 0)),         # -> VMEM-resident
                pl.BlockSpec((1, C), lambda i: (0, 0)),         # across grid steps
            ],
            out_specs=pl.BlockSpec((TB, C), lambda i: (i, 0)),
        ),
        compiler_params=pltpu.CompilerParams(
            dimension_semantics=("parallel",)),                  # v7x: 2 TCs split B
    )(t2, w1, b1, w2, b2)
    return out


# ---------------- deterministic parameter init (PyTorch layouts) ----------------
def init_params(key, C):
    k1, k2, k3, k4 = jax.random.split(key, 4)

    def nrm(k, shape, scale=0.1):
        return scale * jax.random.normal(k, shape, dtype=jnp.float32)

    return {
        "lin1_w": nrm(k1, (C, C // 4)),   # nn.Linear(C//4, C): weight [out, in]
        "lin1_b": nrm(k2, (C,)),
        "lin2_w": nrm(k3, (C, C)),        # nn.Linear(C, C)
        "lin2_b": nrm(k4, (C,)),
    }


# ---------------- pure-JAX reference (mirrors PyTorch semantics) ----------------
def reference(t, params, n_channels):
    half_dim = n_channels // 8
    scale = math.log(10000.0) / (half_dim - 1)
    freqs = jnp.exp(jnp.arange(half_dim, dtype=jnp.float32) * -scale)
    emb = t[:, None] * freqs[None, :]
    emb = jnp.concatenate([jnp.sin(emb), jnp.cos(emb)], axis=1)
    h = emb @ params["lin1_w"].T + params["lin1_b"]
    h = h * jax.nn.sigmoid(h)
    return h @ params["lin2_w"].T + params["lin2_b"]


if __name__ == "__main__":
    B, C = 8, 128   # n_channels = 128 -> sinusoidal dim 32, lin1: 32->128, lin2: 128->128
    key = jax.random.PRNGKey(0)
    kt, kp = jax.random.split(key)
    t = jax.random.uniform(kt, (B,), dtype=jnp.float32, minval=0.0, maxval=100.0)
    params = init_params(kp, C)
    prepared = prepare_params(params)   # one-time layout prep (not a per-call cost)

    out = time_embedding(t, prepared, C)
    out = jax.block_until_ready(out)

    assert out.shape == (B, C)
    ref = reference(t, params, C)
    # approx EUP reciprocal in Swish is the only intentional deviation from f32
    np.testing.assert_allclose(np.asarray(out), np.asarray(ref), rtol=5e-3, atol=5e-3)
    print("KERNEL_OK")
</pallas_src>

<mosaic_0001>
module attributes {stable_mosaic.version = 11 : i64} {
  func.func @_time_embedding_kernel(%arg0: i32, %arg1: memref<8x1xf32, #tpu.memory_space<vmem>>, %arg2: memref<32x128xf32, #tpu.memory_space<vmem>>, %arg3: memref<1x128xf32, #tpu.memory_space<vmem>>, %arg4: memref<128x128xf32, #tpu.memory_space<vmem>>, %arg5: memref<1x128xf32, #tpu.memory_space<vmem>>, %arg6: memref<8x128xf32, #tpu.memory_space<vmem>>) attributes {dimension_semantics = [#tpu.dimension_semantics<parallel>], iteration_bounds = array<i64: 1>, scalar_prefetch = 0 : i64, scratch_operands = 0 : i64, tpu.core_type = #tpu.core_type<tc>, window_params = [{transform_indices = @transform_0, window_bounds = array<i64: 8, 1>}, {pipeline_mode = #tpu.pipeline_mode<synchronous>, transform_indices = @transform_1, window_bounds = array<i64: 32, 128>}, {pipeline_mode = #tpu.pipeline_mode<synchronous>, transform_indices = @transform_2, window_bounds = array<i64: 1, 128>}, {pipeline_mode = #tpu.pipeline_mode<synchronous>, transform_indices = @transform_3, window_bounds = array<i64: 128, 128>}, {pipeline_mode = #tpu.pipeline_mode<synchronous>, transform_indices = @transform_4, window_bounds = array<i64: 1, 128>}, {transform_indices = @transform_5, window_bounds = array<i64: 8, 128>}]} {
    %0 = tpu.iota {dimensions = array<i32: 1>} : vector<1x16xi32>
    %1 = arith.sitofp %0 : vector<1x16xi32> to vector<1x16xf32>
    %cst = arith.constant -0.614022672 : f32
    %2 = vector.broadcast %cst : f32 to vector<1x16xf32>
    %3 = arith.mulf %1, %2 : vector<1x16xf32>
    %4 = math.exp %3 : vector<1x16xf32>
    %c0 = arith.constant 0 : index
    %c0_0 = arith.constant 0 : index
    %5 = vector.load %arg1[%c0, %c0_0] : memref<8x1xf32, #tpu.memory_space<vmem>>, vector<8x1xf32>
    %6 = vector.broadcast %5 : vector<8x1xf32> to vector<8x16xf32>
    %7 = vector.broadcast %4 : vector<1x16xf32> to vector<8x16xf32>
    %8 = arith.mulf %6, %7 : vector<8x16xf32>
    %9 = math.sin %8 : vector<8x16xf32>
    %10 = math.cos %8 : vector<8x16xf32>
    %c0_1 = arith.constant 0 : index
    %c0_2 = arith.constant 0 : index
    %11 = vector.load %arg2[%c0_1, %c0_2] : memref<32x128xf32, #tpu.memory_space<vmem>>, vector<16x128xf32>
    %c16 = arith.constant 16 : index
    %c0_3 = arith.constant 0 : index
    %12 = vector.load %arg2[%c16, %c0_3] : memref<32x128xf32, #tpu.memory_space<vmem>>, vector<16x128xf32>
    %cst_4 = arith.constant dense<0.000000e+00> : vector<8x128xf32>
    %13 = tpu.matmul %9, %11, %cst_4 {dimension_numbers = #tpu.dot_dimension_numbers<[1], [0], [0], [1], [0, 0, 1, 1], [], []>, precision = #tpu.contract_precision<fp32>} : vector<8x16xf32>, vector<16x128xf32>, vector<8x128xf32> -> vector<8x128xf32>
    %cst_5 = arith.constant dense<0.000000e+00> : vector<8x128xf32>
    %14 = tpu.matmul %10, %12, %cst_5 {dimension_numbers = #tpu.dot_dimension_numbers<[1], [0], [0], [1], [0, 0, 1, 1], [], []>, precision = #tpu.contract_precision<fp32>} : vector<8x16xf32>, vector<16x128xf32>, vector<8x128xf32> -> vector<8x128xf32>
    %15 = arith.addf %13, %14 : vector<8x128xf32>
    %c0_6 = arith.constant 0 : index
    %c0_7 = arith.constant 0 : index
    %16 = vector.load %arg3[%c0_6, %c0_7] : memref<1x128xf32, #tpu.memory_space<vmem>>, vector<1x128xf32>
    %17 = vector.broadcast %16 : vector<1x128xf32> to vector<8x128xf32>
    %18 = arith.addf %15, %17 : vector<8x128xf32>
    %cst_8 = arith.constant 0.000000e+00 : f32
    %19 = vector.broadcast %cst_8 : f32 to vector<8x128xf32>
    %20 = arith.subf %19, %18 : vector<8x128xf32>
    %21 = math.exp %20 : vector<8x128xf32>
    %cst_9 = arith.constant 1.000000e+00 : f32
    %22 = vector.broadcast %cst_9 : f32 to vector<8x128xf32>
    %23 = arith.addf %22, %21 : vector<8x128xf32>
    %24 = tpu.reciprocal %23 {approx = true} : vector<8x128xf32> -> vector<8x128xf32>
    %25 = arith.mulf %18, %24 : vector<8x128xf32>
    %c0_10 = arith.constant 0 : index
    %c0_11 = arith.constant 0 : index
    %26 = vector.load %arg4[%c0_10, %c0_11] : memref<128x128xf32, #tpu.memory_space<vmem>>, vector<128x128xf32>
    %cst_12 = arith.constant dense<0.000000e+00> : vector<8x128xf32>
    %27 = tpu.matmul %25, %26, %cst_12 {dimension_numbers = #tpu.dot_dimension_numbers<[1], [0], [0], [1], [0, 0, 1, 1], [], []>, precision = #tpu.contract_precision<fp32>} : vector<8x128xf32>, vector<128x128xf32>, vector<8x128xf32> -> vector<8x128xf32>
    %c0_13 = arith.constant 0 : index
    %c0_14 = arith.constant 0 : index
    %28 = vector.load %arg5[%c0_13, %c0_14] : memref<1x128xf32, #tpu.memory_space<vmem>>, vector<1x128xf32>
    %29 = vector.broadcast %28 : vector<1x128xf32> to vector<8x128xf32>
    %30 = arith.addf %27, %29 : vector<8x128xf32>
    %c0_15 = arith.constant 0 : index
    %c0_16 = arith.constant 0 : index
    %31 = vector.load %arg6[%c0_15, %c0_16] : memref<8x128xf32, #tpu.memory_space<vmem>>, vector<8x128xf32>
    tpu.vector_store %arg6[%c0_15, %c0_16], %30 {strides = array<i32>} : memref<8x128xf32, #tpu.memory_space<vmem>>, vector<8x128xf32>,
    return
  }
  func.func @transform_0(%arg0: i32) -> (i32, i32) {
    %c0_i32 = arith.constant 0 : i32
    %c0_i32_0 = arith.constant 0 : i32
    return %arg0, %c0_i32 : i32, i32
  }
  func.func @transform_1(%arg0: i32) -> (i32, i32) {
    %c0_i32 = arith.constant 0 : i32
    %c0_i32_0 = arith.constant 0 : i32
    %c0_i32_1 = arith.constant 0 : i32
    return %c0_i32, %c0_i32_0 : i32, i32
  }
  func.func @transform_2(%arg0: i32) -> (i32, i32) {
    %c0_i32 = arith.constant 0 : i32
    %c0_i32_0 = arith.constant 0 : i32
    %c0_i32_1 = arith.constant 0 : i32
    return %c0_i32, %c0_i32_0 : i32, i32
  }
  func.func @transform_3(%arg0: i32) -> (i32, i32) {
    %c0_i32 = arith.constant 0 : i32
    %c0_i32_0 = arith.constant 0 : i32
    %c0_i32_1 = arith.constant 0 : i32
    return %c0_i32, %c0_i32_0 : i32, i32
  }
  func.func @transform_4(%arg0: i32) -> (i32, i32) {
    %c0_i32 = arith.constant 0 : i32
    %c0_i32_0 = arith.constant 0 : i32
    %c0_i32_1 = arith.constant 0 : i32
    return %c0_i32, %c0_i32_0 : i32, i32
  }
  func.func @transform_5(%arg0: i32) -> (i32, i32) {
    %c0_i32 = arith.constant 0 : i32
    %c0_i32_0 = arith.constant 0 : i32
    return %arg0, %c0_i32 : i32, i32
  }
}

</mosaic_0001>

<bundles_post_ra>
// kernel: tpu_custom_call.1
= control target key start
LH: loop header
LB: loop body
LE: loop exit
PB: predicated region body
PF: predicated region fallthrough
CT: control target
= control target key end

     0   :  { %10 = vsyncpa [#allocation3], 0  ;;  %s1605_s0 = inlined_call_operand.vmem [shape: f32[8,1], index: 0, kind: input, shape index: {}]   ;;  %s1606_s1 = inlined_call_operand.hbm [shape: f32[32,128], index: 1, kind: input, shape index: {}]   ;;  %s1607_s2 = inlined_call_operand.vmem [shape: f32[1,128], index: 2, kind: input, shape index: {}]   ;;  %s1608_s3 = inlined_call_operand.hbm [shape: f32[128,128], index: 3, kind: input, shape index: {}]   ;;  %s1609_s4 = inlined_call_operand.vmem [shape: f32[1,128], index: 4, kind: input, shape index: {}]   ;;  %s1610_s5 = inlined_call_operand.hbm [shape: f32[8,128], index: 5, kind: output, shape index: {}]  }
   0x1   :  { %11 = vsyncpa [#allocation6], 0 }
   0x2   :  { %12 = vsyncpa [#allocation4], 0  ;;  %s19_s20 = sshll.u32 %s1606_s1, 4  ;;  %s1200_s21 = smov [#allocation2]   ;;  %s20_s20 = int_to_ptr.hbm [resolvable:$true] %s19_s20 }
   0x3   :  { %s21_s22 = sshll.u32 %s1200_s21, 4  ;;  %s34_s25 = sshll.u32 %s1608_s3, 4  ;;  %s22_s22 = int_to_ptr.vmem [resolvable:$true] %s21_s22  ;;  %s35_s25 = int_to_ptr.hbm [resolvable:$true] %s34_s25 }
   0x4   :  { %s1201_s26 = smov 128   ;;  %s1202_s27 = smov 8  }
   0x5   :  { %27 = dma.hbm_to_vmem [thread:$0]  %s20_s20, 512, %s22_s22, [#allocation3], %s1201_s26, %s1201_s26, %s1202_s27  }
   0x6   :  { %s1203_s28 = smov [#allocation5]  }
   0x7   :  { %s36_s29 = sshll.u32 %s1203_s28, 4  ;;  %s37_s29 = int_to_ptr.vmem [resolvable:$true] %s36_s29 }
   0x8   :  { %42 = dma.hbm_to_vmem [thread:$0]  %s35_s25, 2048, %s37_s29, [#allocation6], %s1201_s26, %s1201_s26, %s1202_s27  }
   0x9   :  { %1194 = dma.done.wait [#allocation3], 512  }
   0xa   :  { %1195 = vsyncadd [#allocation3], 4294966784 }
   0xb   :  { %1196 = dma.done.wait [#allocation6], 2048  }
   0xc   :  { %1197 = vsyncadd [#allocation6], 4294965248  ;;  %v1204_v0 = vmov 0   ;;  %v59_v1 = vld [vmem:[%s1605_s0] sm:$0xff]  ;;  %v53_v2 = vlaneseq  ;;  %v1205_v21 = vmov 683565275  }
   0xd   :  { %1113 = vset.pattern.permute.xlu0 %v1204_v0  ;;  %v1206_v23 = vmov 2475754826   ;;  %v1207_v26 = vmov 2131351028   ;;  %v1208_v29 = vmov 2102212464  }
   0xe   :  { %62 = vperm.xlu0 %1113, %v59_v1   ;;  %v54_v3 = vand.u32 127, %v53_v2  ;;  %v1209_v32 = vmov 920167782   ;;  %v1210_v35 = vmov 1326507024   ;;  %s1211_s7 = smov [#allocation7]  }
   0xf   :  { %s1082_s8 = sshll.u32 %s1211_s7, 4  ;;  %s1084_s11 = sshll.u32 %s1610_s5, 4  ;;  %s1083_s8 = int_to_ptr.vmem [resolvable:$true] %s1082_s8  ;;  %s1085_s11 = int_to_ptr.hbm [resolvable:$true] %s1084_s11 }
  0x10   :  { %v55_v4 = vcvt.s32.f32 %v54_v3 }
  0x12   :  { %v56_v5 = vmul.f32 -0.6140227, %v55_v4 }
  0x14   :  { %v57_v6 = vmul.f32 1.442695, %v56_v5 }
  0x16   :  { %1116 = vpow2.f32 %v57_v6 }
  0x1c   :  { %v1117_v7 = vpop.eup %1116 }
  0x80   :  { %v63_v8 = vpop.permute.xlu0 %62 }
  0x81   :  { %v1252_v9 = vmul.f32 %v1117_v7, %v63_v8 }
  0x83   :  { %v69_v10 = vand.u32 2139095040, %v1252_v9  ;;  %v66_v13 = vand.u32 2147483647, %v1252_v9  ;;  %vm68_vm12 = vcmp.lt.s32.totalorder %v1252_v9, 0 }
  0x85   :  { %v70_v11 = vshrl.u32 %v69_v10, 23  ;;  %v73_v15 = vand.u32 8388607, %v66_v13  ;;  %vm67_vm13 = vcmp.le.f32.partialorder %v66_v13, 0.7853982 }
  0x87   :  { %v1095_v12 = vadd.s32 4294967169, %v70_v11  ;;  %v74_v19 = vor.u32 8388608, %v73_v15 }
  0x89   :  { %v76_v14 = vadd.s32 1, %v1095_v12  ;;  %v1269_v42 = vshll.u32 %v74_v19, 8 }
  0x8b   :  { %vm77_vm0 = vcmp.gt.s32.totalorder %v76_v14, 0  ;;  %v115_v51 = vand.u32 65535, %v1269_v42  ;;  %v116_v52 = vshrl.u32 %v1269_v42, 16 }
  0x8c   :  { %v78_v16 = vsel %vm77_vm0, %v76_v14, 0 }
  0x8d   :  { %v80_v17 = vand.u32 31, %v78_v16  ;;  %v1260_v20 = vshrl.u32 %v78_v16, 5 }
  0x8f   :  { %v1258_v18 = vsub.s32 32, %v80_v17  ;;  %v83_v22 = vshll.u32 %v1205_v21, %v80_v17  ;;  %v86_v24 = vshll.u32 %v1206_v23, %v80_v17  ;;  %v89_v28 = vshll.u32 %v1207_v26, %v80_v17 }
  0x90   :  { %v92_v31 = vshll.u32 %v1208_v29, %v80_v17  ;;  %v95_v34 = vshll.u32 %v1209_v32, %v80_v17  ;;  %vm98_vm1 = vcmp.lt.s32.totalorder %v1260_v20, 1  ;;  %vm101_vm2 = vcmp.lt.s32.totalorder %v1260_v20, 4 }
  0x91   :  { %v84_v25 = vshrl.u32 %v1206_v23, %v1258_v18  ;;  %v87_v27 = vshrl.u32 %v1207_v26, %v1258_v18  ;;  %v90_v30 = vshrl.u32 %v1208_v29, %v1258_v18  ;;  %v93_v33 = vshrl.u32 %v1209_v32, %v1258_v18 }
  0x92   :  { %v96_v36 = vshrl.u32 %v1210_v35, %v1258_v18  ;;  %vm100_vm3 = vcmp.lt.s32.totalorder %v1260_v20, 3  ;;  %vm99_vm4 = vcmp.lt.s32.totalorder %v1260_v20, 2  ;;  %v82_v16 = vshrl.u32 %v1205_v21, %v1258_v18  ;;  %v377_v20 = vld [vmem:[#allocation2 + $0x10] sm:$0xff] }
  0x93   :  { %v85_v37 = vor.u32 %v84_v25, %v83_v22  ;;  %v88_v38 = vor.u32 %v87_v27, %v86_v24  ;;  %v91_v39 = vor.u32 %v90_v30, %v89_v28  ;;  %v94_v40 = vor.u32 %v93_v33, %v92_v31 }
  0x94   :  { %v97_v41 = vor.u32 %v96_v36, %v95_v34 }
  0x95   :  { %v106_v43 = vsel %vm98_vm1, %v85_v37, %v88_v38  ;;  %v110_v44 = vsel %vm98_vm1, %v88_v38, %v91_v39  ;;  %v107_v45 = vsel %vm101_vm2, %v94_v40, 920167782  ;;  %v103_v12 = vsel %vm101_vm2, %v91_v39, 2102212464 }
  0x96   :  { %v111_v46 = vsel %vm101_vm2, %v97_v41, 1326507024  ;;  %v108_v47 = vsel %vm100_vm3, %v91_v39, %v107_v45  ;;  %v102_v25 = vsel %vm98_vm1, %v82_v16, %v85_v37  ;;  %v104_v26 = vsel %vm100_vm3, %v88_v38, %v103_v12 }
  0x97   :  { %v112_v48 = vsel %vm100_vm3, %v94_v40, %v111_v46  ;;  %v109_v49 = vsel %vm99_vm4, %v106_v43, %v108_v47  ;;  %v105_v18 = vsel %vm99_vm4, %v102_v25, %v104_v26  ;;  %vm379_vm1 = vcmask 130048  }
  0x98   :  { %v113_v50 = vsel %vm99_vm4, %v110_v44, %v112_v48  ;;  %v139_v55 = vand.u32 65535, %v109_v49  ;;  %v140_v56 = vshrl.u32 %v109_v49, 16  ;;  %v159_v33 = vmul.u32 %v1269_v42, %v105_v18  ;;  %v378_v44 = vld [vmem:[#allocation2 + $0x18] sm:$0xff]  ;;  %v376_v48 = vld [vmem:[#allocation2 + $0x8] sm:$0xff] }
  0x99   :  { %v117_v53 = vand.u32 65535, %v113_v50  ;;  %v118_v54 = vshrl.u32 %v113_v50, 16  ;;  %v1307_v46 = vand.u32 4294901760, %v378_v44  ;;  %v1312_v42 = vand.u32 4294901760, %v377_v20 }
  0x9a   :  { %v142_v59 = vmul.u32 %v140_v56, %v115_v51  ;;  %v143_v60 = vmul.u32 %v139_v55, %v116_v52  ;;  %v141_v1 = vmul.u32 %v139_v55, %v115_v51  ;;  %v144_v5 = vmul.u32 %v140_v56, %v116_v52 }
  0x9b   :  { %v120_v57 = vmul.u32 %v118_v54, %v115_v51  ;;  %v121_v58 = vmul.u32 %v117_v53, %v116_v52  ;;  %v119_v61 = vmul.u32 %v117_v53, %v115_v51  ;;  %v122_v63 = vmul.u32 %v118_v54, %v116_v52  ;;  %398 = vmatpush.msra.mxu2 %v1307_v46 }
  0x9c   :  { %v145_v2 = vshll.u32 %v142_v59, 16  ;;  %v147_v7 = vshll.u32 %v143_v60, 16  ;;  %v146_v23 = vshrl.u32 %v142_v59, 16  ;;  %v148_v29 = vshrl.u32 %v143_v60, 16 }
  0x9d   :  { %v123_v62 = vshll.u32 %v120_v57, 16  ;;  %v125_v3 = vshll.u32 %v121_v58, 16  ;;  %v124_v17 = vshrl.u32 %v120_v57, 16  ;;  %v126_v27 = vshrl.u32 %v121_v58, 16  ;;  %400 = vmatpush.msra.mxu2 %v1312_v42 }
  0x9e   :  { %vm149_vm6 = vc.u32 %v141_v1, %v145_v2  ;;  %v151_v8 = vadd.s32 %v145_v2, %v141_v1  ;;  %v1310_v47 = vsub.f32 %v378_v44, %v1307_v46  ;;  %v1315_v50 = vand.u32 4294901760, %v376_v48 }
  0x9f   :  { %vm127_vm5 = vc.u32 %v119_v61, %v123_v62  ;;  %v129_v4 = vadd.s32 %v123_v62, %v119_v61  ;;  %v150_v11 = vsel %vm149_vm6, 1, %v1204_v0  ;;  %v1320_v55 = vsub.f32 %v377_v20, %v1312_v42 }
  0xa0   :  { %v128_v6 = vsel %vm127_vm5, 1, %v1204_v0  ;;  %v152_v15 = vadd.s32 %v150_v11, %v144_v5  ;;  %vm153_vm8 = vc.u32 %v151_v8, %v147_v7  ;;  %v155_v32 = vadd.s32 %v151_v8, %v147_v7  ;;  %644 = vmatpush.msra.mxu1 %v1315_v50  ;;  %457 = vmatpush.msrb.mxu2 %v1310_v47 }
  0xa1   :  { %v130_v10 = vadd.s32 %v128_v6, %v122_v63  ;;  %vm131_vm7 = vc.u32 %v129_v4, %v125_v3  ;;  %v154_v22 = vsel %vm153_vm8, 1, %v1204_v0  ;;  %v426_v54 = vand.u32 4294901760, %v1310_v47  ;;  %v375_v3 = vld [vmem:[#allocation2] sm:$0xff] }
  0xa2   :  { %v132_v14 = vsel %vm131_vm7, 1, %v1204_v0  ;;  %v156_v24 = vadd.s32 %v154_v22, %v152_v15  ;;  %v1323_v56 = vsub.f32 %v376_v48, %v1315_v50  ;;  %v432_v61 = vand.u32 4294901760, %v1320_v55  ;;  %460 = vmatpush.msrb.mxu2 %v1320_v55 }
  0xa3   :  { %v134_v19 = vadd.s32 %v132_v14, %v130_v10  ;;  %v427_v60 = vsub.f32 %v1310_v47, %v426_v54  ;;  %v1336_v5 = vand.u32 4294901760, %v375_v3  ;;  %vm209_vm5 = vweird.f32 %v1252_v9 }
  0xa4   :  { %v157_v30 = vadd.s32 %v156_v24, %v146_v23  ;;  %619 = vmatpush.msra.mxu0 %v1323_v56  ;;  %v433_v2 = vsub.f32 %v1320_v55, %v432_v61  ;;  %v588_v20 = vand.u32 4294901760, %v1323_v56  ;;  %v729_v55 = vld [vmem:[#allocation5 + $0x70] sm:$0xff] }
  0xa5   :  { %v135_v28 = vadd.s32 %v134_v19, %v124_v17  ;;  %v428_v1 = vand.u32 4294901760, %v427_v60  ;;  %v1339_v10 = vsub.f32 %v375_v3, %v1336_v5  ;;  %646 = vmatpush.msra.mxu1 %v1336_v5 }
  0xa6   :  { %v158_v21 = vadd.s32 %v157_v30, %v148_v29  ;;  %v434_v6 = vand.u32 4294901760, %v433_v2 }
  0xa7   :  { %v136_v31 = vadd.s32 %v135_v28, %v126_v27  ;;  %429 = vmatpush.msra.mxu3 %v428_v1  ;;  %622 = vmatpush.msra.mxu0 %v1339_v10 }
  0xa8   :  { %v162_v0 = vadd.s32 1, %v158_v21 }
  0xa9   :  { %vm161_vm9 = vc.u32 %v136_v31, %v155_v32  ;;  %v160_v51 = vadd.s32 %v155_v32, %v136_v31  ;;  %435 = vmatpush.msra.mxu3 %v434_v6 }
  0xaa   :  { %v163_v34 = vsel %vm161_vm9, %v162_v0, %v158_v21 }
  0xab   :  { %v164_v35 = vadd.s32 %v163_v34, %v159_v33  ;;  %482 = vmatpush.msrb.mxu3 %v1307_v46 }
  0xad   :  { %v165_v36 = vadd.s32 536870912, %v164_v35  ;;  %484 = vmatpush.msrb.mxu3 %v1312_v42 }
  0xaf   :  { %v166_v37 = vshrl.u32 %v165_v36, 30 }
  0xb1   :  { %v167_v39 = vshll.u32 %v166_v37, 30  ;;  %v190_v15 = vsub.s32 4, %v166_v37 }
  0xb3   :  { %v168_v38 = vsub.s32 %v164_v35, %v167_v39  ;;  %v191_v23 = vsel %vm68_vm12, %v190_v15, %v166_v37 }
  0xb4   :  { %v193_v26 = vsel %vm67_vm13, 0, %v191_v23  ;;  %v725_v23 = vld [vmem:[#allocation5 + $0x50] sm:$0xff] }
  0xb5   :  { %vm169_vm10 = vcmp.lt.s32.totalorder %v168_v38, 0  ;;  %v170_v40 = vsub.s32 0, %v168_v38  ;;  %v210_v31 = vadd.s32 3, %v193_v26  ;;  %v365_v13 = vand.u32 3, %v193_v26 }
  0xb7   :  { %v171_v41 = vsel %vm169_vm10, %v170_v40, %v168_v38  ;;  %v211_v33 = vand.u32 3, %v210_v31  ;;  %vm366_vm14 = vcmp.lt.s32.totalorder %v365_v13, 2  ;;  %vm367_vm15 = vcmp.eq.s32.totalorder %v365_v13, 0 }
  0xb8   :  { %v172_v43 = vclz %v171_v41  ;;  %vm370_vm0 = vcmp.eq.s32.totalorder %v365_v13, 2  ;;  %v723_v13 = vld [vmem:[#allocation5 + $0x40] sm:$0xff] }
  0xb9   :  { %vm212_vm2 = vcmp.lt.s32.totalorder %v211_v33, 2  ;;  %vm213_vm3 = vcmp.eq.s32.totalorder %v211_v33, 0  ;;  %vm216_vm4 = vcmp.eq.s32.totalorder %v211_v33, 2 }
  0xba   :  { %v1096_v45 = vadd.s32 4294967294, %v172_v43 }
  0xbc   :  { %vm1097_vm11 = vcmp.lt.s32.totalorder %v1096_v45, 0 }
  0xbd   :  { %v175_v49 = vsel %vm1097_vm11, 0, %v1096_v45 }
  0xbe   :  { %v176_v52 = vsub.s32 32, %v175_v49  ;;  %v180_v53 = vsub.s32 4294967266, %v175_v49  ;;  %v177_v57 = vshll.u32 %v168_v38, %v175_v49 }
  0xc0   :  { %v178_v58 = vshrl.u32 %v160_v51, %v176_v52  ;;  %v181_v59 = vadd.s32 127, %v180_v53  ;;  %v594_v53 = vand.u32 4294901760, %v1339_v10 }
  0xc2   :  { %v179_v62 = vor.u32 %v178_v58, %v177_v57  ;;  %v182_v63 = vshll.u32 %v181_v59, 23  ;;  %v589_v59 = vsub.f32 %v1323_v56, %v588_v20 }
  0xc4   :  { %v183_v4 = vor.u32 4788187, %v182_v63  ;;  %v186_v8 = vcvt.s32.f32 %v179_v62  ;;  %v595_v62 = vsub.f32 %v1339_v10, %v594_v53  ;;  %v590_v1 = vand.u32 4294901760, %v589_v59 }
  0xc6   :  { %v184_v7 = vand.u32 2147483647, %v183_v4  ;;  %v596_v3 = vand.u32 4294901760, %v595_v62 }
  0xc8   :  { %v187_v11 = vmul.f32 %v186_v8, %v184_v7  ;;  %v727_v7 = vld [vmem:[#allocation5 + $0x60] sm:$0xff] }
  0xca   :  { %v188_v12 = vxor.u32 2147483648, %v187_v11 }
  0xcc   :  { %v189_v14 = vsel %vm68_vm12, %v188_v12, %v187_v11  ;;  %v1389_v12 = vand.u32 4294901760, %v727_v7 }
  0xcd   :  { %v192_v16 = vsel %vm67_vm13, %v1252_v9, %v189_v14  ;;  %v726_v14 = vld [vmem:[#allocation5 + $0x58] sm:$0xff] }
  0xce   :  { %v194_v17 = vmul.f32 %v192_v16, %v192_v16 }
  0xd0   :  { %v202_v19 = vmul.f32 -0.00019511016, %v194_v17  ;;  %v195_v22 = vmul.f32 -0.001358992, %v194_v17 }
  0xd2   :  { %v203_v24 = vadd.f32 0.008332121, %v202_v19  ;;  %v196_v25 = vadd.f32 0.041655596, %v195_v22  ;;  %v1399_v19 = vsub.f32 %v727_v7, %v1389_v12  ;;  %v1403_v22 = vand.u32 4294901760, %v726_v14 }
  0xd4   :  { %v204_v27 = vmul.f32 %v203_v24, %v194_v17  ;;  %v197_v28 = vmul.f32 %v196_v25, %v194_v17  ;;  %v796_v26 = vand.u32 4294901760, %v1399_v19 }
  0xd6   :  { %v205_v29 = vadd.f32 -0.16666654, %v204_v27  ;;  %v198_v30 = vadd.f32 -0.4999988, %v197_v28  ;;  %v1410_v27 = vand.u32 4294901760, %v725_v23  ;;  %v1414_v28 = vsub.f32 %v726_v14, %v1403_v22  ;;  %v717_v14 = vld [vmem:[#allocation5 + $0x10] sm:$0xff] }
  0xd7   :  { %v797_v31 = vsub.f32 %v1399_v19, %v796_v26 }
  0xd8   :  { %v206_v32 = vmul.f32 %v205_v29, %v194_v17  ;;  %v199_v18 = vmul.f32 %v198_v30, %v194_v17  ;;  %v724_v29 = vld [vmem:[#allocation5 + $0x48] sm:$0xff] }
  0xda   :  { %v207_v21 = vadd.f32 1.0, %v206_v32  ;;  %v200_v0 = vadd.f32 1.0, %v199_v18  ;;  %v1422_v32 = vsub.f32 %v725_v23, %v1410_v27  ;;  %v1424_v18 = vand.u32 4294901760, %v724_v29 }
  0xdc   :  { %v208_v34 = vmul.f32 %v207_v21, %v192_v16  ;;  %v217_v35 = vxor.u32 2147483648, %v200_v0  ;;  %v802_v21 = vand.u32 4294901760, %v1414_v28  ;;  %v808_v33 = vand.u32 4294901760, %v1422_v32 }
  0xde   :  { %v214_v36 = vxor.u32 2147483648, %v208_v34  ;;  %v372_v39 = vsel %vm370_vm0, %v217_v35, %v208_v34  ;;  %v218_v40 = vsel %vm216_vm4, %v217_v35, %v208_v34  ;;  %v1431_v34 = vsub.f32 %v724_v29, %v1424_v18  ;;  %v716_v29 = vld [vmem:[#allocation5 + $0x8] sm:$0xff] }
  0xdf   :  { %v1433_v35 = vand.u32 4294901760, %v723_v13 }
  0xe0   :  { %v369_v37 = vsel %vm367_vm15, %v200_v0, %v214_v36  ;;  %v215_v38 = vsel %vm213_vm3, %v200_v0, %v214_v36  ;;  %v798_v0 = vand.u32 4294901760, %v797_v31  ;;  %v803_v36 = vsub.f32 %v1414_v28, %v802_v21 }
  0xe1   :  { %v373_v41 = vsel %vm366_vm14, %v369_v37, %v372_v39  ;;  %v219_v43 = vsel %vm212_vm2, %v215_v38, %v218_v40  ;;  %v722_v37 = vld [vmem:[#allocation5 + $0x38] sm:$0xff]  ;;  %v809_v39 = vsub.f32 %v1422_v32, %v808_v33  ;;  %v814_v38 = vand.u32 4294901760, %v1431_v34 }
  0xe2   :  { %v374_v44 = vsel %vm209_vm5, nan, %v373_v41  ;;  %v220_v45 = vsel %vm209_vm5, nan, %v219_v43  ;;  %v1446_v40 = vsub.f32 %v723_v13, %v1433_v35  ;;  %v1448_v41 = vand.u32 4294901760, %v722_v37 }
  0xe3   :  { %v381_v48 = vsel %vm379_vm1, %v374_v44, 0  ;;  %v543_v49 = vsel %vm379_vm1, %v220_v45, 0  ;;  %v804_v43 = vand.u32 4294901760, %v803_v36  ;;  %v721_v44 = vld [vmem:[#allocation5 + $0x30] sm:$0xff]  ;;  %v810_v45 = vand.u32 4294901760, %v809_v39 }
  0xe4   :  { %v401_v51 = vand.u32 4294901760, %v381_v48  ;;  %v563_v52 = vand.u32 4294901760, %v543_v49  ;;  %v1521_v36 = vand.u32 4294901760, %v716_v29 }
  0xe6   :  { %437 = vmatmul.f32.vlgmr.msra.gmra.mxu3 %v401_v51  ;;  %v564_v57 = vsub.f32 %v543_v49, %v563_v52  ;;  %v402_v58 = vsub.f32 %v381_v48, %v401_v51  ;;  %v820_v48 = vand.u32 4294901760, %v1446_v40  ;;  %v1458_v49 = vsub.f32 %v722_v37, %v1448_v41  ;;  %v715_v37 = vld [vmem:[#allocation5] sm:$0xff] }
  0xe7   :  { %534 = vmatpush.msra.mxu3 %v1307_v46 }
  0xe8   :  { %625 = vmatmul.f32.vlgmr.msra.gmra.mxu0 %v564_v57  ;;  %v565_v9 = vand.u32 4294901760, %v564_v57  ;;  %v403_v60 = vand.u32 4294901760, %v402_v58 }
  0xe9   :  { %536 = vmatpush.msra.mxu3 %v1312_v42  ;;  %v730_v42 = vld [vmem:[#allocation5 + $0x78] sm:$0xff] }
  0xea   :  { %650 = vmatmul.f32.vlgmr.msra.gmra.mxu1 %v565_v9  ;;  %v404_v63 = vsub.f32 %v402_v58, %v403_v60  ;;  %v566_v46 = vsub.f32 %v564_v57, %v565_v9  ;;  %v821_v57 = vsub.f32 %v1446_v40, %v820_v48 }
  0xec   :  { %v405_v2 = vand.u32 4294901760, %v404_v63  ;;  %v567_v47 = vand.u32 4294901760, %v566_v46  ;;  %v822_v62 = vand.u32 4294901760, %v821_v57  ;;  %v718_v46 = vld [vmem:[#allocation5 + $0x18] sm:$0xff] }
  0xee   :  { %406 = vmatmul.f32.vlgmr.msra.gmra.mxu2 %v405_v2  ;;  %488 = vmatmul.f32.vlgmr.msrb.gmra.mxu3 %v403_v60  ;;  %v719_v60 = vld [vmem:[#allocation5 + $0x20] sm:$0xff] }
  0xef   :  { %509 = vmatpush.msra.mxu2 %v426_v54  ;;  %591 = vmatpush.msrb.mxu3 %v590_v1  ;;  %v1364_v54 = vand.u32 4294901760, %v730_v42  ;;  %v1482_v2 = vand.u32 4294901760, %v719_v60 }
  0xf1   :  { %513 = vmatpush.msra.mxu2 %v432_v61  ;;  %597 = vmatpush.msrb.mxu3 %v596_v3  ;;  %v1367_v56 = vsub.f32 %v730_v42, %v1364_v54  ;;  %v728_v61 = vld [vmem:[#allocation5 + $0x68] sm:$0xff] }
  0xf2   :  { %736 = vmatpush.msrb.mxu0 %v1364_v54  ;;  %v1377_v6 = vand.u32 4294901760, %v728_v61 }
  0xf3   :  { %v778_v4 = vand.u32 4294901760, %v1367_v56 }
  0xf4   :  { %v1387_v11 = vsub.f32 %v728_v61, %v1377_v6  ;;  %v1492_v61 = vand.u32 4294901760, %v718_v46 }
  0xf5   :  { %v779_v8 = vsub.f32 %v1367_v56, %v778_v4 }
  0xf6   :  { %463 = vmatmul.f32.vlgmr.msrb.gmra.mxu2 %v402_v58  ;;  %538 = vmatmul.f32.vlgmr.msra.gmra.mxu3 %v401_v51  ;;  %v790_v17 = vand.u32 4294901760, %v1387_v11  ;;  %v826_v58 = vand.u32 4294901760, %v1458_v49  ;;  %v1505_v23 = vsub.f32 %v718_v46, %v1492_v61 }
  0xf7   :  { %560 = vmatpush.msrb.mxu2 %v1315_v50  ;;  %696 = vmatpush.msra.mxu3 %v1315_v50  ;;  %v1369_v50 = vand.u32 4294901760, %v729_v55  ;;  %v780_v15 = vand.u32 4294901760, %v779_v8 }
  0xf8   :  { %v791_v25 = vsub.f32 %v1387_v11, %v790_v17  ;;  %v827_v63 = vsub.f32 %v1458_v49, %v826_v58  ;;  %v850_v13 = vand.u32 4294901760, %v1505_v23 }
  0xf9   :  { %562 = vmatpush.msrb.mxu2 %v1336_v5  ;;  %698 = vmatpush.msra.mxu3 %v1336_v5  ;;  %v1375_v5 = vsub.f32 %v729_v55, %v1369_v50  ;;  %v1490_v55 = vsub.f32 %v719_v60, %v1482_v2 }
  0xfa   :  { %738 = vmatpush.msrb.mxu0 %v1369_v50  ;;  %781 = vmatpush.msrb.mxu1 %v780_v15  ;;  %v792_v30 = vand.u32 4294901760, %v791_v25 }
  0xfb   :  { %v784_v10 = vand.u32 4294901760, %v1375_v5 }
  0xfc   :  { %740 = vmatpush.msrb.mxu0 %v1377_v6 }
  0xfd   :  { %v785_v16 = vsub.f32 %v1375_v5, %v784_v10 }
  0xfe   :  { %515 = vmatmul.f32.vlgmr.msra.gmra.mxu2 %v401_v51  ;;  %599 = vmatmul.f32.vlgmr.msrb.gmra.mxu3 %v563_v52  ;;  %v1461_v51 = vand.u32 4294901760, %v721_v44 }
  0xff   :  { %671 = vmatpush.msra.mxu2 %v588_v20  ;;  %932 = vmatpush.msrb.mxu3 %v1364_v54  ;;  %v786_v24 = vand.u32 4294901760, %v785_v16  ;;  %v815_v20 = vsub.f32 %v1431_v34, %v814_v38  ;;  %v844_v16 = vand.u32 4294901760, %v1490_v55 }
 0x100   :  { %742 = vmatpush.msrb.mxu0 %v1389_v12  ;;  %v1473_v9 = vsub.f32 %v721_v44, %v1461_v51 }
 0x101   :  { %675 = vmatpush.msra.mxu2 %v594_v53  ;;  %934 = vmatpush.msrb.mxu3 %v1369_v50  ;;  %v816_v53 = vand.u32 4294901760, %v815_v20  ;;  %v845_v31 = vsub.f32 %v1490_v55, %v844_v16 }
 0x102   :  { %744 = vmatpush.msrb.mxu0 %v1403_v22  ;;  %787 = vmatpush.msrb.mxu1 %v786_v24  ;;  %v832_v3 = vand.u32 4294901760, %v1473_v9  ;;  %v1507_v24 = vand.u32 4294901760, %v717_v14 }
 0x103   :  { %936 = vmatpush.msrb.mxu3 %v1377_v6  ;;  %v846_v39 = vand.u32 4294901760, %v845_v31 }
 0x104   :  { %746 = vmatpush.msrb.mxu0 %v1410_v27  ;;  %793 = vmatpush.msrb.mxu1 %v792_v30  ;;  %v833_v8 = vsub.f32 %v1473_v9, %v832_v3 }
 0x105   :  { %938 = vmatpush.msrb.mxu3 %v1389_v12 }
 0x106   :  { %568 = vmatmul.f32.vlgmr.msrb.gmra.mxu2 %v567_v47  ;;  %700 = vmatmul.f32.vlgmr.msra.gmra.mxu3 %v563_v52  ;;  %v828_v47 = vand.u32 4294901760, %v827_v63  ;;  %v834_v25 = vand.u32 4294901760, %v833_v8 }
 0x107   :  { %879 = vmatpush.msrb.mxu2 %v1367_v56  ;;  %940 = vmatpush.msrb.mxu3 %v1403_v22 }
 0x108   :  { %748 = vmatpush.msrb.mxu0 %v1424_v18  ;;  %799 = vmatpush.msrb.mxu1 %v798_v0  ;;  %v1517_v0 = vsub.f32 %v717_v14, %v1507_v24 }
 0x109   :  { %882 = vmatpush.msrb.mxu2 %v1375_v5  ;;  %942 = vmatpush.msrb.mxu3 %v1410_v27 }
 0x10a   :  { %750 = vmatpush.msrb.mxu0 %v1433_v35  ;;  %805 = vmatpush.msrb.mxu1 %v804_v43  ;;  %v851_v43 = vsub.f32 %v1505_v23, %v850_v13  ;;  %v856_v44 = vand.u32 4294901760, %v1517_v0 }
 0x10b   :  { %885 = vmatpush.msrb.mxu2 %v1387_v11  ;;  %944 = vmatpush.msrb.mxu3 %v1424_v18 }
 0x10c   :  { %752 = vmatpush.msrb.mxu0 %v1448_v41  ;;  %811 = vmatpush.msrb.mxu1 %v810_v45  ;;  %v1528_v45 = vand.u32 4294901760, %v715_v37  ;;  %v857_v57 = vsub.f32 %v1517_v0, %v856_v44 }
 0x10d   :  { %888 = vmatpush.msrb.mxu2 %v1399_v19  ;;  %946 = vmatpush.msrb.mxu3 %v1433_v35 }
 0x10e   :  { %677 = vmatmul.f32.vlgmr.msra.gmra.mxu2 %v563_v52  ;;  %v720_v52 = vld [vmem:[#allocation5 + $0x28] sm:$0xff]  ;;  %754 = vmatpush.msrb.mxu0 %v1461_v51  ;;  %v1540_v60 = vsub.f32 %v715_v37, %v1528_v45  ;;  %v858_v63 = vand.u32 4294901760, %v857_v57 }
 0x10f   :  { %891 = vmatpush.msrb.mxu2 %v1414_v28  ;;  %v1468_v59 = vand.u32 4294901760, %v720_v52  ;;  %948 = vmatpush.msrb.mxu3 %v1448_v41 }
 0x110   :  { %817 = vmatpush.msrb.mxu1 %v816_v53  ;;  %v852_v53 = vand.u32 4294901760, %v851_v43  ;;  %v868_v46 = vand.u32 4294901760, %v1540_v60 }
 0x111   :  { %894 = vmatpush.msrb.mxu2 %v1422_v32  ;;  %v1480_v1 = vsub.f32 %v720_v52, %v1468_v59  ;;  %950 = vmatpush.msrb.mxu3 %v1461_v51  ;;  %v1533_v52 = vsub.f32 %v716_v29, %v1521_v36 }
 0x112   :  { %756 = vmatpush.msrb.mxu0 %v1468_v59  ;;  %823 = vmatpush.msrb.mxu1 %v822_v62  ;;  %v869_v14 = vsub.f32 %v1540_v60, %v868_v46 }
 0x113   :  { %897 = vmatpush.msrb.mxu2 %v1431_v34  ;;  %v838_v42 = vand.u32 4294901760, %v1480_v1  ;;  %952 = vmatpush.msrb.mxu3 %v1468_v59  ;;  %v862_v62 = vand.u32 4294901760, %v1533_v52 }
 0x114   :  { %758 = vmatpush.msrb.mxu0 %v1482_v2  ;;  %829 = vmatpush.msrb.mxu1 %v828_v47 }
 0x115   :  { %900 = vmatpush.msrb.mxu2 %v1446_v40  ;;  %v839_v15 = vsub.f32 %v1480_v1, %v838_v42  ;;  %954 = vmatpush.msrb.mxu3 %v1482_v2  ;;  %v863_v8 = vsub.f32 %v1533_v52, %v862_v62 }
 0x116   :  { %760 = vmatpush.msrb.mxu0 %v1492_v61  ;;  %835 = vmatpush.msrb.mxu1 %v834_v25  ;;  %v870_v25 = vand.u32 4294901760, %v869_v14 }
 0x117   :  { %903 = vmatpush.msrb.mxu2 %v1458_v49  ;;  %v840_v30 = vand.u32 4294901760, %v839_v15  ;;  %956 = vmatpush.msrb.mxu3 %v1492_v61  ;;  %v864_v15 = vand.u32 4294901760, %v863_v8 }
 0x118   :  { %762 = vmatpush.msrb.mxu0 %v1507_v24 }
 0x119   :  { %906 = vmatpush.msrb.mxu2 %v1473_v9  ;;  %958 = vmatpush.msrb.mxu3 %v1507_v24 }
 0x11a   :  { %841 = vmatpush.msrb.mxu1 %v840_v30  ;;  %764 = vmatpush.msrb.mxu0 %v1521_v36 }
 0x11b   :  { %909 = vmatpush.msrb.mxu2 %v1480_v1  ;;  %960 = vmatpush.msrb.mxu3 %v1521_v36 }
 0x11c   :  { %847 = vmatpush.msrb.mxu1 %v846_v39  ;;  %766 = vmatpush.msrb.mxu0 %v1528_v45 }
 0x11d   :  { %912 = vmatpush.msrb.mxu2 %v1490_v55  ;;  %962 = vmatpush.msrb.mxu3 %v1528_v45 }
 0x11e   :  { %973 = vmatpush.msra.mxu0 %v778_v4  ;;  %853 = vmatpush.msrb.mxu1 %v852_v53 }
 0x11f   :  { %915 = vmatpush.msrb.mxu2 %v1505_v23 }
 0x120   :  { %977 = vmatpush.msra.mxu0 %v784_v10  ;;  %859 = vmatpush.msrb.mxu1 %v858_v63 }
 0x121   :  { %918 = vmatpush.msrb.mxu2 %v1517_v0 }
 0x122   :  { %981 = vmatpush.msra.mxu0 %v790_v17  ;;  %865 = vmatpush.msrb.mxu1 %v864_v15 }
 0x123   :  { %921 = vmatpush.msrb.mxu2 %v1533_v52 }
 0x124   :  { %985 = vmatpush.msra.mxu0 %v796_v26  ;;  %871 = vmatpush.msrb.mxu1 %v870_v25 }
 0x125   :  { %924 = vmatpush.msrb.mxu2 %v1540_v60 }
 0x126   :  { %1040 = vmatpush.msra.mxu1 %v1364_v54  ;;  %989 = vmatpush.msra.mxu0 %v802_v21 }
 0x128   :  { %1042 = vmatpush.msra.mxu1 %v1369_v50  ;;  %993 = vmatpush.msra.mxu0 %v808_v33  ;;  %v1114_v33 = vld [vmem:[%s1607_s2] ss:$0 sm:$0xff] }
 0x12a   :  { %1044 = vmatpush.msra.mxu1 %v1377_v6  ;;  %997 = vmatpush.msra.mxu0 %v814_v38 }
 0x12c   :  { %1046 = vmatpush.msra.mxu1 %v1389_v12  ;;  %1001 = vmatpush.msra.mxu0 %v820_v48 }
 0x12e   :  { %1048 = vmatpush.msra.mxu1 %v1403_v22  ;;  %1005 = vmatpush.msra.mxu0 %v826_v58 }
 0x130   :  { %1050 = vmatpush.msra.mxu1 %v1410_v27  ;;  %1009 = vmatpush.msra.mxu0 %v832_v3 }
 0x132   :  { %1052 = vmatpush.msra.mxu1 %v1424_v18  ;;  %1013 = vmatpush.msra.mxu0 %v838_v42  ;;  %v1115_v42 = vld [vmem:[%s1609_s4] ss:$0 sm:$0xff] }
 0x134   :  { %1054 = vmatpush.msra.mxu1 %v1433_v35  ;;  %1017 = vmatpush.msra.mxu0 %v844_v16 }
 0x136   :  { %1056 = vmatpush.msra.mxu1 %v1448_v41  ;;  %1021 = vmatpush.msra.mxu0 %v850_v13 }
 0x138   :  { %1058 = vmatpush.msra.mxu1 %v1461_v51  ;;  %1025 = vmatpush.msra.mxu0 %v856_v44 }
 0x13a   :  { %1060 = vmatpush.msra.mxu1 %v1468_v59  ;;  %1029 = vmatpush.msra.mxu0 %v862_v62 }
 0x13c   :  { %1062 = vmatpush.msra.mxu1 %v1482_v2  ;;  %1033 = vmatpush.msra.mxu0 %v868_v46 }
 0x13e   :  { %1064 = vmatpush.msra.mxu1 %v1492_v61 }
 0x140   :  { %1066 = vmatpush.msra.mxu1 %v1507_v24 }
 0x142   :  { %1068 = vmatpush.msra.mxu1 %v1521_v36 }
 0x144   :  { %1070 = vmatpush.msra.mxu1 %v1528_v45 }
 0x165   :  { %v626_v26 = vpop.f32.mrf.mxu0 }
 0x167   :  { %v651_v28 = vpop.f32.mrf.mxu1 }
 0x169   :  { %v438_v7 = vpop.f32.mrf.mxu3 }
 0x171   :  { %v407_v20 = vpop.f32.mrf.mxu2  ;;  %v489_v47 = vpop.f32.mrf.mxu3 }
 0x172   :  { %v439_v4 = vadd.f32 %v438_v7, %v407_v20 }
 0x179   :  { %v464_v56 = vpop.f32.mrf.mxu2  ;;  %v539_v10 = vpop.f32.mrf.mxu3 }
 0x17a   :  { %v465_v5 = vadd.f32 %v464_v56, %v439_v4 }
 0x17c   :  { %v490_v17 = vadd.f32 %v489_v47, %v465_v5 }
 0x181   :  { %v516_v11 = vpop.f32.mrf.mxu2  ;;  %v600_v6 = vpop.f32.mrf.mxu3 }
 0x182   :  { %v517_v54 = vadd.f32 %v516_v11, %v490_v17 }
 0x184   :  { %v540_v50 = vadd.f32 %v539_v10, %v517_v54 }
 0x189   :  { %v569_v12 = vpop.f32.mrf.mxu2  ;;  %v701_v34 = vpop.f32.mrf.mxu3 }
 0x18a   :  { %v570_v19 = vadd.f32 %v569_v12, %v540_v50 }
 0x18c   :  { %v601_v22 = vadd.f32 %v600_v6, %v570_v19 }
 0x18e   :  { %v627_v27 = vadd.f32 %v626_v26, %v601_v22 }
 0x190   :  { %v652_v32 = vadd.f32 %v651_v28, %v627_v27 }
 0x191   :  { %v678_v18 = vpop.f32.mrf.mxu2 }
 0x192   :  { %v679_v21 = vadd.f32 %v678_v18, %v652_v32 }
 0x194   :  { %v702_v35 = vadd.f32 %v701_v34, %v679_v21 }
 0x196   :  { %v708_v38 = vadd.f32 %v1114_v33, %v702_v35 }
 0x198   :  { %v709_v40 = vsub.f32 0.0, %v708_v38 }
 0x19a   :  { %v710_v41 = vmul.f32 1.442695, %v709_v40 }
 0x19c   :  { %1118 = vpow2.f32 %v710_v41 }
 0x1a2   :  { %v1119_v48 = vpop.eup %1118 }
 0x1a3   :  { %v712_v49 = vadd.f32 1.0, %v1119_v48 }
 0x1a5   :  { %1120 = vrcp.f32 %v712_v49 }
 0x1ab   :  { %v1121_v51 = vpop.eup %1120 }
 0x1ac   :  { %v714_v58 = vmul.f32 %v1121_v51, %v708_v38 }
 0x1ae   :  { %v767_v59 = vand.u32 4294901760, %v714_v58 }
 0x1b0   :  { %873 = vmatmul.f32.vlgmr.msrb.gmra.mxu1 %v767_v59  ;;  %v768_v9 = vsub.f32 %v714_v58, %v767_v59 }
 0x1b2   :  { %927 = vmatmul.f32.vlgmr.msrb.gmra.mxu2 %v768_v9  ;;  %v769_v1 = vand.u32 4294901760, %v768_v9 }
 0x1b4   :  { %966 = vmatmul.f32.vlgmr.msrb.gmra.mxu3 %v769_v1  ;;  %v770_v2 = vsub.f32 %v768_v9, %v769_v1 }
 0x1b6   :  { %v771_v3 = vand.u32 4294901760, %v770_v2 }
 0x1b8   :  { %772 = vmatmul.f32.vlgmr.msrb.gmra.mxu0 %v771_v3  ;;  %1072 = vmatmul.f32.vlgmr.msra.gmra.mxu1 %v767_v59 }
 0x1c0   :  { %1035 = vmatmul.f32.vlgmr.msra.gmra.mxu0 %v767_v59 }
 0x22d   :  { %v874_v55 = vpop.f32.mrf.mxu1 }
 0x235   :  { %v773_v61 = vpop.f32.mrf.mxu0  ;;  %v928_v23 = vpop.f32.mrf.mxu2 }
 0x236   :  { %v774_v7 = vadd.f32 %v1115_v42, %v773_v61  ;;  %v1073_v0 = vpop.f32.mrf.mxu1 }
 0x237   :  { %v967_v29 = vpop.f32.mrf.mxu3 }
 0x238   :  { %v875_v16 = vadd.f32 %v874_v55, %v774_v7 }
 0x23a   :  { %v929_v24 = vadd.f32 %v928_v23, %v875_v16 }
 0x23c   :  { %v968_v30 = vadd.f32 %v967_v29, %v929_v24 }
 0x23d   :  { %v1036_v31 = vpop.f32.mrf.mxu0 }
 0x23e   :  { %v1037_v13 = vadd.f32 %v1036_v31, %v968_v30 }
 0x240   :  { %v1074_v36 = vadd.f32 %v1073_v0, %v1037_v13 }
 0x242   :  { %1076 = vst [vmem:[#allocation7] sm:$0xff] %v1074_v36 }
 0x243   :  { %1087 = dma.vmem_to_hbm [thread:$0]  %s1083_s8, 128, %s1085_s11, [#allocation4]  }
 0x244   :  { %1198 = dma.done.wait [#allocation4], 128  }
 0x245   :  { %1199 = vsyncadd [#allocation4], 4294967168 }
 0x246   :  { %1092 = vsyncpa [#allocation3], 1 }
 0x247   :  { %1093 = vsyncpa [#allocation6], 1 }
 0x248   :  { %1094 = vsyncpa [#allocation4], 1 }

</bundles_post_ra>
